<compile_context>
chip_gen: v7x
topology: tpu7x:2x2x1
jax: 0.10.0
libtpu: 0.0.40
codegen_flags: <defaults>
</compile_context>

<pallas_src>
import functools
import numpy as np

import jax
import jax.numpy as jnp
from jax.experimental import pallas as pl
from jax.experimental.pallas import tpu as pltpu

TN_LIN = 512   # max row tile for the thin, mem-bound linear kernels
TN_GVA = 512   # max row tile for the fused attention kernel


# ----------------------------------------------------------------------------
# helpers
# ----------------------------------------------------------------------------
def _row_tile(n, tmax):
    # multiple of 8, and >= 2 grid steps whenever n allows it (megacore sharding on v7x,
    # avoids computing on mostly-padding tiles for small / post-pool point counts)
    t = ((-(-n // 2)) + 7) // 8 * 8     # ceil(n/2) rounded up to a multiple of 8
    return max(8, min(tmax, t))


def _pad_to(x, npad, axis=0):
    n = x.shape[axis]
    if npad == n:
        return x
    pad = [(0, 0)] * x.ndim
    pad[axis] = (0, npad - n)
    return jnp.pad(x, pad)


def _cparams(block_bytes):
    # double-buffered blocks + intermediate headroom; capped well inside v7x's 64 MiB VMEM
    lim = int(min(60 * 2 ** 20, 16 * 2 ** 20 + 4 * block_bytes))
    return pltpu.CompilerParams(
        dimension_semantics=("parallel",),
        vmem_limit_bytes=lim,
    )


# ----------------------------------------------------------------------------
# Pallas kernel 1: fused Linear (+BN affine, bias folded into shift) (+ReLU)
# ----------------------------------------------------------------------------
def _linear_bn_relu_kernel(x_ref, w_ref, scale_ref, shift_ref, o_ref, *, relu):
    y = jnp.dot(x_ref[...], w_ref[...], preferred_element_type=jnp.float32)
    y = y * scale_ref[...] + shift_ref[...]
    if relu:
        y = jnp.maximum(y, 0.0)
    o_ref[...] = y.astype(o_ref.dtype)


def linear_bn_relu(x, W, scale=None, shift=None, relu=False):
    n, cin = x.shape
    cout = W.shape[1]
    if scale is None:
        scale = jnp.ones((cout,), jnp.float32)
    if shift is None:
        shift = jnp.zeros((cout,), jnp.float32)
    t = _row_tile(n, TN_LIN)
    npad = pl.cdiv(n, t) * t
    xp = _pad_to(x, npad)
    blk_bytes = (t * cin + cin * cout + 2 * cout + t * cout) * 4
    out = pl.pallas_call(
        functools.partial(_linear_bn_relu_kernel, relu=relu),
        out_shape=jax.ShapeDtypeStruct((npad, cout), jnp.float32),
        grid=(npad // t,),
        in_specs=[
            pl.BlockSpec((t, cin), lambda i: (i, 0)),
            pl.BlockSpec((cin, cout), lambda i: (0, 0)),
            pl.BlockSpec((1, cout), lambda i: (0, 0)),
            pl.BlockSpec((1, cout), lambda i: (0, 0)),
        ],
        out_specs=pl.BlockSpec((t, cout), lambda i: (i, 0)),
        compiler_params=_cparams(blk_bytes),
    )(xp, W, scale.reshape(1, cout), shift.reshape(1, cout))
    return out[:n]


# ----------------------------------------------------------------------------
# Pallas kernel 2: fused fc1+norm1+ReLU + QKV projection
#   x (N,C) -> h = relu(norm1(fc1(x))) -> y = (h @ Wqkv) * scale + shift  (bias pre-folded)
#   ReLU applied only to the q,k lanes (jnp.where on a precomputed lane mask).
#   Single lane-dense (TN, 3C) output; q / k / v are split in the wrapper.
# ----------------------------------------------------------------------------
def _fc1_qkv_kernel(x_ref, w1_ref, s1_ref, t1_ref, wqkv_ref, sc_ref, sh_ref, rm_ref, o_ref):
    h = jnp.dot(x_ref[...], w1_ref[...], preferred_element_type=jnp.float32)
    h = jnp.maximum(h * s1_ref[...] + t1_ref[...], 0.0)
    y = jnp.dot(h, wqkv_ref[...], preferred_element_type=jnp.float32)
    y = y * sc_ref[...] + sh_ref[...]
    y = jnp.where(rm_ref[...] > 0.5, jnp.maximum(y, 0.0), y)   # selective ReLU (q,k only)
    o_ref[...] = y.astype(o_ref.dtype)


def fc1_qkv(feat, W1, s1, t1, a):
    n, c = feat.shape
    t = _row_tile(n, TN_LIN)
    npad = pl.cdiv(n, t) * t
    xp = _pad_to(feat, npad)
    blk_bytes = (t * c + c * c + 2 * c + c * 3 * c + 3 * 3 * c + t * 3 * c) * 4
    y = pl.pallas_call(
        _fc1_qkv_kernel,
        out_shape=jax.ShapeDtypeStruct((npad, 3 * c), jnp.float32),
        grid=(npad // t,),
        in_specs=[
            pl.BlockSpec((t, c), lambda i: (i, 0)),
            pl.BlockSpec((c, c), lambda i: (0, 0)),
            pl.BlockSpec((1, c), lambda i: (0, 0)),
            pl.BlockSpec((1, c), lambda i: (0, 0)),
            pl.BlockSpec((c, 3 * c), lambda i: (0, 0)),
            pl.BlockSpec((1, 3 * c), lambda i: (0, 0)),
            pl.BlockSpec((1, 3 * c), lambda i: (0, 0)),
            pl.BlockSpec((1, 3 * c), lambda i: (0, 0)),
        ],
        out_specs=pl.BlockSpec((t, 3 * c), lambda i: (i, 0)),
        compiler_params=_cparams(blk_bytes),
    )(xp, W1, s1.reshape(1, c), t1.reshape(1, c),
      a["Wqkv"], a["qkv_scale"].reshape(1, 3 * c), a["qkv_shift"].reshape(1, 3 * c),
      a["relu_mask"].reshape(1, 3 * c))
    return y[:n]


# ----------------------------------------------------------------------------
# Pallas kernel 3: grouped vector attention + transformer block tail
#   q (N,C) f32, g (3,N,K,C) bf16 = [key|value|pe-proj], mask (N,K,1) f32,
#   cp_center (N,C) f32, identity (N,C) f32.
#   Weight encoding + softmax run at group width (g lanes) then the softmaxed weights are
#   expanded to C lanes with one (g,C) matmul against the group expander E on the MXU.
# ----------------------------------------------------------------------------
def _gva_tail_kernel(q_ref, g_ref, m_ref, cpc_ref, idn_ref,
                     pb1_ref, pw2_ref, pb2_ref,
                     ww1_ref, wb1_ref, ww2_ref, wb2_ref, exp_ref,
                     s2_ref, t2_ref, w3_ref, s3_ref, t3_ref, o_ref):
    tn, c = q_ref.shape
    k = m_ref.shape[1]
    grp = ww1_ref.shape[1]

    gall = g_ref[...].astype(jnp.float32)     # single bf16 load, upcast once (v5e-safe)
    key = gall[0]                             # (tn, k, c)   leading-axis slab indexing: free
    val = gall[1]
    cpg = gall[2]                             # neighbor coords projected by the pe 1st layer
    mask = m_ref[...]                         # (tn, k, 1): 1 valid, 0 for padded (-1) idx
    q = q_ref[...]

    # pe-bias MLP.  First layer folded into the per-point coord projection:
    #   Linear1(pos) = ((coord_nbr - coord_ctr) * mask) @ pW1 = (cpg - cp_ctr) * mask
    h1 = (cpg - cpc_ref[...][:, None, :]) * mask + pb1_ref[...]
    h1 = jnp.maximum(h1, 0.0)
    peb = (jnp.dot(h1.reshape(tn * k, c), pw2_ref[...],
                   preferred_element_type=jnp.float32) + pb2_ref[...]).reshape(tn, k, c)

    rel = key - q[:, None, :] + peb           # relation_qk (+ pe bias)
    val = val + peb                           # value (+ pe bias)

    # weight encoding at group width (C -> g -> g), grouped softmax over neighbors,
    # then post-softmax masking exactly as in the reference.
    hid = jnp.dot(rel.reshape(tn * k, c), ww1_ref[...],
                  preferred_element_type=jnp.float32) + wb1_ref[...]
    hid = jnp.maximum(hid, 0.0)
    logits = (jnp.dot(hid, ww2_ref[...],
                      preferred_element_type=jnp.float32) + wb2_ref[...]).reshape(tn, k, grp)
    logits = logits - jnp.max(logits, axis=1, keepdims=True)
    ez = jnp.exp(logits)
    w = ez * pl.reciprocal(jnp.sum(ez, axis=1, keepdims=True), approx=True)
    w = w * mask

    # expand (tn,k,grp) weights to C lanes via the (grp,C) expander (MXU, lane-dense)
    w_exp = jnp.dot(w.reshape(tn * k, grp), exp_ref[...],
                    preferred_element_type=jnp.float32).reshape(tn, k, c)

    attn = jnp.sum(val * w_exp, axis=1)       # (tn, c) grouped weighted sum

    # block tail: y = relu(norm2(attn)); y = norm3(fc3(y)); out = relu(identity + y)
    y = jnp.maximum(attn * s2_ref[...] + t2_ref[...], 0.0)
    y = jnp.dot(y, w3_ref[...], preferred_element_type=jnp.float32)
    y = y * s3_ref[...] + t3_ref[...]
    o_ref[...] = jnp.maximum(idn_ref[...] + y, 0.0).astype(o_ref.dtype)


def gva_block_tail(q, g, mask, cp, identity, a, blk):
    n, c = q.shape
    k = g.shape[2]
    grp = a["wW2"].shape[0]
    t = _row_tile(n, TN_GVA)
    npad = pl.cdiv(n, t) * t

    qp = _pad_to(q, npad)
    gp = _pad_to(g, npad, axis=1)
    mp = _pad_to(mask, npad)
    cpp = _pad_to(cp, npad)
    idp = _pad_to(identity, npad)

    blk_bytes = (4 * t * c + t * k + 3 * c * c + 2 * c * grp + grp * grp + 12 * c) * 4 \
                + 3 * t * k * c * 2
    out = pl.pallas_call(
        _gva_tail_kernel,
        out_shape=jax.ShapeDtypeStruct((npad, c), jnp.float32),
        grid=(npad // t,),
        in_specs=[
            pl.BlockSpec((t, c), lambda i: (i, 0)),             # q
            pl.BlockSpec((3, t, k, c), lambda i: (0, i, 0, 0)),  # [key|value|pe-proj] bf16
            pl.BlockSpec((t, k, 1), lambda i: (i, 0, 0)),        # neighbor mask
            pl.BlockSpec((t, c), lambda i: (i, 0)),              # cp (center)
            pl.BlockSpec((t, c), lambda i: (i, 0)),              # identity
            pl.BlockSpec((1, c), lambda i: (0, 0)),              # pb1
            pl.BlockSpec((c, c), lambda i: (0, 0)),              # pW2
            pl.BlockSpec((1, c), lambda i: (0, 0)),              # pb2
            pl.BlockSpec((c, grp), lambda i: (0, 0)),            # wW1 (group width)
            pl.BlockSpec((1, grp), lambda i: (0, 0)),            # wb1
            pl.BlockSpec((grp, grp), lambda i: (0, 0)),          # wW2
            pl.BlockSpec((1, grp), lambda i: (0, 0)),            # wb2
            pl.BlockSpec((grp, c), lambda i: (0, 0)),            # group->lane expander E
            pl.BlockSpec((1, c), lambda i: (0, 0)),              # norm2 scale
            pl.BlockSpec((1, c), lambda i: (0, 0)),              # norm2 shift
            pl.BlockSpec((c, c), lambda i: (0, 0)),              # fc3 W
            pl.BlockSpec((1, c), lambda i: (0, 0)),              # norm3 scale
            pl.BlockSpec((1, c), lambda i: (0, 0)),              # norm3 shift
        ],
        out_specs=pl.BlockSpec((t, c), lambda i: (i, 0)),
        compiler_params=_cparams(blk_bytes),
    )(qp, gp, mp, cpp, idp,
      a["pb1"].reshape(1, c), a["pW2"], a["pb2"].reshape(1, c),
      a["wW1"], a["wb1"].reshape(1, grp), a["wW2"], a["wb2"].reshape(1, grp), a["E"],
      blk["n2"][0].reshape(1, c), blk["n2"][1].reshape(1, c),
      blk["fc3_W"], blk["n3"][0].reshape(1, c), blk["n3"][1].reshape(1, c))
    return out[:n]


# ----------------------------------------------------------------------------
# JAX / host glue: knn, gather, voxel pooling
# ----------------------------------------------------------------------------
def knn_search(coord, offset, k):
    # TODO(synk): top-k neighbor search (argsort) has no clean Pallas equivalent; host numpy.
    coord_np = np.asarray(jax.device_get(coord))
    offs = [int(o) for o in np.asarray(jax.device_get(offset))]
    n = coord_np.shape[0]
    idx = np.full((n, k), -1, dtype=np.int32)
    start = 0
    for end in offs:
        seg = coord_np[start:end]
        n_seg = end - start
        d = np.sum((seg[:, None, :] - seg[None, :, :]) ** 2, axis=-1)
        kk = min(k, n_seg)
        nn = np.argsort(d, axis=1)[:, :kk]
        idx[start:end, :kk] = nn + start
        start = end
    return jnp.asarray(idx, dtype=jnp.int32)


def offset2batch(offset, n):
    return jnp.searchsorted(offset, jnp.arange(n), side="right").astype(jnp.int32)


def batch2offset(batch, nb):
    counts = jax.ops.segment_sum(jnp.ones_like(batch), batch, num_segments=nb)
    return jnp.cumsum(counts).astype(jnp.int32)


def voxel_pool(coord, feat, offset, grid_size, fc_W, fc_scale, fc_shift):
    # TODO(synk): voxel unique / sort / segment reductions have no clean Pallas equivalent.
    n = coord.shape[0]
    nb = offset.shape[0]
    batch = offset2batch(offset, n)
    feat = linear_bn_relu(feat, fc_W, fc_scale, fc_shift, relu=True)   # Pallas hot path
    start = jax.ops.segment_min(coord, batch, num_segments=nb)
    vox = jnp.floor((coord - start[batch]) / grid_size).astype(jnp.int32)
    vmax = jnp.max(vox, axis=0) + 1
    key = ((batch * vmax[0] + vox[:, 0]) * vmax[1] + vox[:, 1]) * vmax[2] + vox[:, 2]
    uniq, cluster = jnp.unique(key, return_inverse=True)
    cluster = cluster.reshape(-1).astype(jnp.int32)
    m = int(uniq.shape[0])
    counts = jax.ops.segment_sum(jnp.ones((n,), jnp.float32), cluster, num_segments=m)
    coord_p = jax.ops.segment_sum(coord, cluster, num_segments=m) / counts[:, None]
    feat_p = jax.ops.segment_max(feat, cluster, num_segments=m)
    batch_p = jax.ops.segment_min(batch, cluster, num_segments=m)
    offset_p = batch2offset(batch_p, nb)
    return coord_p, feat_p, offset_p, cluster


# ----------------------------------------------------------------------------
# Model forward (composition of Pallas kernels + glue)
# ----------------------------------------------------------------------------
def knn_transformer_block(p, feat, coord, knn_idx, mask):
    n, c = feat.shape
    identity = feat
    a = p["attn"]
    # Pallas kernel A: h = relu(norm1(fc1(feat))) ; fused q/k/v projection (single 3C output)
    y = fc1_qkv(feat, p["fc1_W"], p["n1"][0], p["n1"][1], a)
    q = y[:, :c]
    # per-point pe projection (first pe-bias layer folded): tiny (N,3)@(3,C) in XLA
    cp = coord @ a["pW1"]
    # joint gather source stacked on a free leading axis, stored bf16 (halves HBM traffic);
    # appended zero row gives zero key/value/pe-proj for padded (-1) indices.
    src = jnp.stack([y[:, c:2 * c], y[:, 2 * c:], cp], axis=0).astype(jnp.bfloat16)
    srcp = jnp.concatenate([src, jnp.zeros((3, 1, c), jnp.bfloat16)], axis=1)
    safe = jnp.where(knn_idx < 0, n, knn_idx)
    g = jnp.take(srcp, safe, axis=1)                  # (3, N, K, C) bf16
    # Pallas kernel B: attention core + block tail
    return gva_block_tail(q, g, mask, cp, identity, a, p)


def transformer_sequence(blocks, coord, feat, offset, k):
    knn_idx = knn_search(coord, offset, k)
    mask = (knn_idx >= 0).astype(jnp.float32)[:, :, None]       # (N, K, 1)
    for p in blocks:
        feat = knn_transformer_block(p, feat, coord, knn_idx, mask)
    return feat


def point_transformer_network(params, points):
    coord, feat, offset = points
    pe = params["patch_embed"]
    feat = linear_bn_relu(feat, pe["proj_W"], pe["proj_bn"][0], pe["proj_bn"][1], relu=True)
    feat = transformer_sequence(pe["blocks"], coord, feat, offset, pe["k"])
    points = (coord, feat, offset)
    for st in params["enc_stages"]:
        coord, feat, offset = points
        coord, feat, offset, _cluster = voxel_pool(
            coord, feat, offset, st["grid_size"], st["fc_W"], st["fc_bn"][0], st["fc_bn"][1])
        feat = transformer_sequence(st["blocks"], coord, feat, offset, st["k"])
        points = (coord, feat, offset)
    # TODO(synk): decoder (PointDecoder) skipped — class is undefined in the reference (skip_dec=True)
    return points


# ----------------------------------------------------------------------------
# Deterministic parameter init (BN folded; QKV fused with bias folded into shift;
# weight-encoding kept at group width + explicit group->lane expander E)
# ----------------------------------------------------------------------------
def init_linear(key, cin, cout, bias=True):
    k1, k2 = jax.random.split(key)
    bound = 1.0 / np.sqrt(cin)
    W = jax.random.uniform(k1, (cin, cout), jnp.float32, -bound, bound)
    b = jax.random.uniform(k2, (cout,), jnp.float32, -bound, bound) if bias else None
    return W, b


def init_bn_fold(key, c):
    kg, kb, km, kv = jax.random.split(key, 4)
    gamma = 1.0 + 0.1 * jax.random.normal(kg, (c,), jnp.float32)
    beta = 0.1 * jax.random.normal(kb, (c,), jnp.float32)
    mean = 0.1 * jax.random.normal(km, (c,), jnp.float32)
    var = 1.0 + 0.1 * jnp.abs(jax.random.normal(kv, (c,), jnp.float32))
    scale = gamma / jnp.sqrt(var + 1e-5)
    shift = beta - mean * scale
    return scale, shift


def init_gva(key, c, g):
    ks = jax.random.split(key, 11)
    qW, qb = init_linear(ks[0], c, c, True)
    q_scale, q_shift = init_bn_fold(ks[1], c)
    kW, kb = init_linear(ks[2], c, c, True)
    k_scale, k_shift = init_bn_fold(ks[3], c)
    vW, vb = init_linear(ks[4], c, c, True)

    # fused QKV projection; BN affine on q,k; plain linear on v; bias folded into shift
    ones_c = jnp.ones((c,), jnp.float32)
    zeros_c = jnp.zeros((c,), jnp.float32)
    Wqkv = jnp.concatenate([qW, kW, vW], axis=1)
    bqkv = jnp.concatenate([qb, kb, vb])
    qkv_scale = jnp.concatenate([q_scale, k_scale, ones_c])
    qkv_shift = jnp.concatenate([q_shift, k_shift, zeros_c])
    qkv_shift = bqkv * qkv_scale + qkv_shift        # fold the linear bias into the BN shift
    relu_mask = jnp.concatenate([ones_c, ones_c, zeros_c])

    # pe_bias MLP, BN folded into first linear
    pW1, pb1 = init_linear(ks[5], 3, c, True)
    ps, pt = init_bn_fold(ks[6], c)
    pW1, pb1 = pW1 * ps[None, :], pb1 * ps + pt
    pW2, pb2 = init_linear(ks[7], c, c, True)

    # weight encoding MLP at group width, BN folded into first linear; group->lane expander E
    wW1, wb1 = init_linear(ks[8], c, g, True)
    ws, wt = init_bn_fold(ks[9], g)
    wW1, wb1 = wW1 * ws[None, :], wb1 * ws + wt
    wW2, wb2 = init_linear(ks[10], g, g, True)
    ci = c // g
    E = jnp.repeat(jnp.eye(g, dtype=jnp.float32), ci, axis=1)    # (g, c) expander

    return dict(Wqkv=Wqkv, qkv_scale=qkv_scale, qkv_shift=qkv_shift, relu_mask=relu_mask,
                pW1=pW1, pb1=pb1, pW2=pW2, pb2=pb2,
                wW1=wW1, wb1=wb1, wW2=wW2, wb2=wb2, E=E)


def init_block(key, c, g):
    ks = jax.random.split(key, 6)
    fc1_W, _ = init_linear(ks[0], c, c, False)
    n1 = init_bn_fold(ks[1], c)
    attn = init_gva(ks[2], c, g)
    n2 = init_bn_fold(ks[3], c)
    fc3_W, _ = init_linear(ks[4], c, c, False)
    n3 = init_bn_fold(ks[5], c)
    return dict(fc1_W=fc1_W, n1=n1, attn=attn, n2=n2, fc3_W=fc3_W, n3=n3)


def init_network(key, in_dim, hidden_dims, depths, n_heads, ks, grid_sizes):
    keys = jax.random.split(key, 1 + max(1, len(depths) - 1))
    pkeys = jax.random.split(keys[0], depths[0] + 2)
    proj_W, _ = init_linear(pkeys[0], in_dim, hidden_dims[0], False)
    proj_bn = init_bn_fold(pkeys[1], hidden_dims[0])
    pe_blocks = [init_block(pkeys[2 + i], hidden_dims[0], n_heads[0]) for i in range(depths[0])]
    patch_embed = dict(proj_W=proj_W, proj_bn=proj_bn, blocks=pe_blocks, k=ks[0])
    enc_stages = []
    for i in range(len(depths) - 1):
        skeys = jax.random.split(keys[1 + i], depths[i + 1] + 2)
        fc_W, _ = init_linear(skeys[0], hidden_dims[i], hidden_dims[i + 1], False)
        fc_bn = init_bn_fold(skeys[1], hidden_dims[i + 1])
        blocks = [init_block(skeys[2 + j], hidden_dims[i + 1], n_heads[i + 1])
                  for j in range(depths[i + 1])]
        enc_stages.append(dict(fc_W=fc_W, fc_bn=fc_bn, blocks=blocks,
                               grid_size=grid_sizes[i], k=ks[i + 1]))
    return dict(patch_embed=patch_embed, enc_stages=enc_stages)


# ----------------------------------------------------------------------------
if __name__ == "__main__":
    # small config:  PointTransformerNetwork(grid_sizes=[0.3], depths=[1,1], dec_depths=[1],
    #                hidden_dims=[32,64], n_heads=[2,4], ks=[8,8], in_dim=6, skip_dec=True)
    in_dim = 6
    hidden_dims = [32, 64]
    depths = [1, 1]
    n_heads = [2, 4]
    ks = [8, 8]
    grid_sizes = [0.3]

    root = jax.random.PRNGKey(0)
    k_params, k_coord, k_feat = jax.random.split(root, 3)
    params = init_network(k_params, in_dim, hidden_dims, depths, n_heads, ks, grid_sizes)

    N = 96
    coord = jax.random.uniform(k_coord, (N, 3), jnp.float32)
    feat = jax.random.normal(k_feat, (N, in_dim), jnp.float32)
    offset = jnp.array([48, 96], jnp.int32)  # two batches of 48 points

    out_coord, out_feat, out_offset = point_transformer_network(params, (coord, feat, offset))
    jax.block_until_ready(out_feat)
    assert out_feat.shape[1] == hidden_dims[-1]
    print("KERNEL_OK")
</pallas_src>

<mosaic_0001>
module attributes {stable_mosaic.version = 11 : i64} {
  func.func @_linear_bn_relu_kernel(%arg0: i32, %arg1: memref<48x6xf32, #tpu.memory_space<vmem>>, %arg2: memref<6x32xf32, #tpu.memory_space<vmem>>, %arg3: memref<1x32xf32, #tpu.memory_space<vmem>>, %arg4: memref<1x32xf32, #tpu.memory_space<vmem>>, %arg5: memref<48x32xf32, #tpu.memory_space<vmem>>) attributes {dimension_semantics = [#tpu.dimension_semantics<parallel>], iteration_bounds = array<i64: 2>, scalar_prefetch = 0 : i64, scratch_operands = 0 : i64, tpu.core_type = #tpu.core_type<tc>, window_params = [{transform_indices = @transform_0, window_bounds = array<i64: 48, 6>}, {pipeline_mode = #tpu.pipeline_mode<synchronous>, transform_indices = @transform_1, window_bounds = array<i64: 6, 32>}, {pipeline_mode = #tpu.pipeline_mode<synchronous>, transform_indices = @transform_2, window_bounds = array<i64: 1, 32>}, {pipeline_mode = #tpu.pipeline_mode<synchronous>, transform_indices = @transform_3, window_bounds = array<i64: 1, 32>}, {transform_indices = @transform_4, window_bounds = array<i64: 48, 32>}]} {
    %c0 = arith.constant 0 : index
    %c0_0 = arith.constant 0 : index
    %0 = vector.load %arg1[%c0, %c0_0] : memref<48x6xf32, #tpu.memory_space<vmem>>, vector<48x6xf32>
    %c0_1 = arith.constant 0 : index
    %c0_2 = arith.constant 0 : index
    %1 = vector.load %arg2[%c0_1, %c0_2] : memref<6x32xf32, #tpu.memory_space<vmem>>, vector<6x32xf32>
    %cst = arith.constant dense<0.000000e+00> : vector<48x32xf32>
    %2 = tpu.matmul %0, %1, %cst {dimension_numbers = #tpu.dot_dimension_numbers<[1], [0], [0], [1], [0, 0, 1, 1], [], []>} : vector<48x6xf32>, vector<6x32xf32>, vector<48x32xf32> -> vector<48x32xf32>
    %c0_3 = arith.constant 0 : index
    %c0_4 = arith.constant 0 : index
    %3 = vector.load %arg3[%c0_3, %c0_4] : memref<1x32xf32, #tpu.memory_space<vmem>>, vector<1x32xf32>
    %4 = vector.broadcast %3 : vector<1x32xf32> to vector<48x32xf32>
    %5 = arith.mulf %2, %4 : vector<48x32xf32>
    %c0_5 = arith.constant 0 : index
    %c0_6 = arith.constant 0 : index
    %6 = vector.load %arg4[%c0_5, %c0_6] : memref<1x32xf32, #tpu.memory_space<vmem>>, vector<1x32xf32>
    %7 = vector.broadcast %6 : vector<1x32xf32> to vector<48x32xf32>
    %8 = arith.addf %5, %7 : vector<48x32xf32>
    %cst_7 = arith.constant 0.000000e+00 : f32
    %9 = vector.broadcast %cst_7 : f32 to vector<48x32xf32>
    %10 = arith.maximumf %8, %9 : vector<48x32xf32>
    %c0_8 = arith.constant 0 : index
    %c0_9 = arith.constant 0 : index
    %11 = vector.load %arg5[%c0_8, %c0_9] : memref<48x32xf32, #tpu.memory_space<vmem>>, vector<48x32xf32>
    tpu.vector_store %arg5[%c0_8, %c0_9], %10 {strides = array<i32>} : memref<48x32xf32, #tpu.memory_space<vmem>>, vector<48x32xf32>,
    return
  }
  func.func @transform_0(%arg0: i32) -> (i32, i32) {
    %c0_i32 = arith.constant 0 : i32
    %c0_i32_0 = arith.constant 0 : i32
    return %arg0, %c0_i32 : i32, i32
  }
  func.func @transform_1(%arg0: i32) -> (i32, i32) {
    %c0_i32 = arith.constant 0 : i32
    %c0_i32_0 = arith.constant 0 : i32
    %c0_i32_1 = arith.constant 0 : i32
    return %c0_i32, %c0_i32_0 : i32, i32
  }
  func.func @transform_2(%arg0: i32) -> (i32, i32) {
    %c0_i32 = arith.constant 0 : i32
    %c0_i32_0 = arith.constant 0 : i32
    %c0_i32_1 = arith.constant 0 : i32
    return %c0_i32, %c0_i32_0 : i32, i32
  }
  func.func @transform_3(%arg0: i32) -> (i32, i32) {
    %c0_i32 = arith.constant 0 : i32
    %c0_i32_0 = arith.constant 0 : i32
    %c0_i32_1 = arith.constant 0 : i32
    return %c0_i32, %c0_i32_0 : i32, i32
  }
  func.func @transform_4(%arg0: i32) -> (i32, i32) {
    %c0_i32 = arith.constant 0 : i32
    %c0_i32_0 = arith.constant 0 : i32
    return %arg0, %c0_i32 : i32, i32
  }
}

</mosaic_0001>

<bundles_post_ra>
// kernel: tpu_custom_call.1
= control target key start
LH: loop header
LB: loop body
LE: loop exit
PB: predicated region body
PF: predicated region fallthrough
CT: control target
= control target key end

     0   :  { %s500_s15 = smov 0   ;;  %s535_s0 = inlined_call_operand.vmem [shape: f32[96,6], index: 0, kind: input, shape index: {}]   ;;  %s536_s1 = inlined_call_operand.vmem [shape: f32[6,32], index: 1, kind: input, shape index: {}]   ;;  %s537_s2 = inlined_call_operand.vmem [shape: f32[1,32], index: 2, kind: input, shape index: {}]   ;;  %s538_s3 = inlined_call_operand.vmem [shape: f32[1,32], index: 3, kind: input, shape index: {}]   ;;  %s539_s4 = inlined_call_operand.vmem [shape: f32[96,32], index: 4, kind: output, shape index: {}]  }
   0x1 LB: > { %s421_s16 = sadd.s32 4294967295, %s473_s15   ;;  %p425_p0 = scmp.ge.s32.totalorder %s473_s15, 1  ;;  %s473_s15 = sphi %s500_s15, %s14_s15  }
   0x2   : > { %p163_p1 = scmp.lt.s32.totalorder %s473_s15, 3 }
   0x4   : > { %p164_p2 = pnand %p425_p0, %p163_p1 }
   0x5   : > { %v207_v0 = vld [vmem:[%s536_s1] sm:$0x3f] (!%p164_p2)  ;;  %vm227_vm0 = vcmask (!%p164_p2), 1045504   ;;  %s189_s19 = smul.u32 (!%p164_p2), 6, %s421_s16  ;;  %vm208_vm1 = vcmask (!%p164_p2), 48128   ;;  %vm358_vm2 = vcmask (!%p164_p2), 261120  }
   0x6   : > { %167 = sbr.rel (%p164_p2) target bundleno = 242 (0xf2), region = 36  ;;  %457 = vmatprep.subr.msk.mxu1 (!%p164_p2), %vm227_vm0, %v207_v0  ;;  %446 = vmatprep.subr.msk.mxu0 (!%p164_p2), %vm227_vm0, %v207_v0  ;;  %v435_v7 = vld [vmem:[%s537_s2] ss:$0 sm:$0xff] (!%p164_p2) }
   0x7   : > { %458 = vmatpush3.msk.msra.mxu1 (!%p164_p2), %vm227_vm0, %v207_v0  ;;  %p190_p3 = scmp.lt.s32.totalorder (!%p164_p2), %s189_s19, 11  ;;  %447 = vmatpush3.msk.msra.mxu0 (!%p164_p2), %vm227_vm0, %v207_v0  ;;  %v436_v9 = vld [vmem:[%s538_s3] ss:$0 sm:$0xff] (!%p164_p2) }
   0xd   : > { %s541_s19 = smov (!%p190_p3, %s189_s19), 11 }
   0xe   : > { %s426_s20 = sshll.u32 %s541_s19, 3 }
   0xf   : > { %s193_s23 = scalar_lea.vmem %s535_s0, %s426_s20  ;;  %s199_s30 = scalar_lea.vmem %s539_s4, %s426_s20 }
  0x10   : > { %v203_v1 = vld [vmem:[%s193_s23 + $0x10] sm:$0xff]  ;;  %v204_v2 = vld [vmem:[%s193_s23 + $0x18] sm:$0xff]  ;;  %v201_v3 = vld [vmem:[%s193_s23] sm:$0xff] }
  0x11   : > { %451 = vmatprep.mubr.msk.f32.mxu1 %vm208_vm1, %v203_v1  ;;  %448 = vmatprep.mubr.msk.f32.mxu0 %vm208_vm1, %v201_v3  ;;  %v202_v4 = vld [vmem:[%s193_s23 + $0x8] sm:$0xff]  ;;  %v205_v5 = vld [vmem:[%s193_s23 + $0x20] sm:$0xff] }
  0x12   : > { %452 = vmatmul.mubr.msk.f32.vlgmr.msra.gmra.mrb[0].mxu1 %vm208_vm1, %v204_v2  ;;  %449 = vmatmul.mubr.msk.f32.vlgmr.msra.gmra.mrb[0].mxu0 %vm208_vm1, %v202_v4  ;;  %v206_v6 = vld [vmem:[%s193_s23 + $0x28] sm:$0xff] }
  0x13   : > { %454 = vmatprep.mubr.msk.f32.mxu1 %vm208_vm1, %v205_v5 }
  0x16   : > { %455 = vmatmul.mubr.msk.f32.gmra.mrb[2].mxu1 %vm208_vm1, %v206_v6 }
  0xe5   : > { %v453_v8 = vpop.f32.mrb[0].mxu1  ;;  %v450_v10 = vpop.f32.mrb[0].mxu0 }
  0xe6   : > { %v336_v11 = vmul.f32 %v453_v8, %v435_v7  ;;  %v307_v12 = vpop.f32.mrb[1].mxu1  ;;  %v334_v13 = vmul.f32 %v450_v10, %v435_v7  ;;  %v297_v14 = vpop.f32.mrb[1].mxu0 }
  0xe7   : > { %v335_v15 = vmul.f32 %v435_v7, %v307_v12  ;;  %v333_v16 = vmul.f32 %v435_v7, %v297_v14 }
  0xe8   : > { %v349_v17 = vadd.f32 %v436_v9, %v336_v11  ;;  %v347_v18 = vadd.f32 %v436_v9, %v334_v13 }
  0xe9   : > { %v348_v19 = vadd.f32 %v436_v9, %v335_v15  ;;  %v346_v20 = vadd.f32 %v436_v9, %v333_v16  ;;  %v456_v21 = vpop.f32.mrb[2].mxu1 }
  0xea   : > { %v355_v22 = vmax.f32 %v349_v17, 0.0  ;;  %v353_v23 = vmax.f32 %v347_v18, 0.0  ;;  %v338_v24 = vmul.f32 %v456_v21, %v435_v7  ;;  %v317_v25 = vpop.f32.mrb[3].mxu1 }
  0xeb   : > { %v354_v26 = vmax.f32 %v348_v19, 0.0  ;;  %v352_v27 = vmax.f32 %v346_v20, 0.0  ;;  %v337_v28 = vmul.f32 %v435_v7, %v317_v25 }
  0xec   : > { %362 = vst.msk [vmem:[%s199_s30 + $0x18] sm:$0xff] %vm358_vm2, %v355_v22  ;;  %360 = vst.msk [vmem:[%s199_s30 + $0x8] sm:$0xff] %vm358_vm2, %v353_v23  ;;  %v351_v29 = vadd.f32 %v436_v9, %v338_v24 }
  0xed   : > { %361 = vst.msk [vmem:[%s199_s30 + $0x10] sm:$0xff] %vm358_vm2, %v354_v26  ;;  %359 = vst.msk [vmem:[%s199_s30] sm:$0xff] %vm358_vm2, %v352_v27  ;;  %v350_v30 = vadd.f32 %v436_v9, %v337_v28 }
  0xee   : > { %v357_v31 = vmax.f32 %v351_v29, 0.0 }
  0xef   : > { %v356_v32 = vmax.f32 %v350_v30, 0.0 }
  0xf0   : > { %364 = vst.msk [vmem:[%s199_s30 + $0x28] sm:$0xff] %vm358_vm2, %v357_v31 }
  0xf1   : > { %363 = vst.msk [vmem:[%s199_s30 + $0x20] sm:$0xff] %vm358_vm2, %v356_v32 }
  0xf2 PF: > { %s14_s15 = sadd.s32 1, %s473_s15  }
  0xf3   : > { %p11_p4 = scmp.ge.s32.totalorder %s14_s15, 4  }
  0xf5   :  { %13 = sbr.rel (!%p11_p4) target bundleno = 1 (0x1), region = 66 }

</bundles_post_ra>
